<compile_context>
chip_gen: v5e
topology: v5e:2x2
jax: 0.10.0
libtpu: 0.0.40
codegen_flags: <defaults>
</compile_context>

<pallas_src>
import jax
import jax.numpy as jnp
import numpy as np
from jax import lax
from jax.experimental import pallas as pl
from jax.experimental.pallas import tpu as pltpu

# ---- config (mirrors the PyTorch `config` object) --------------------------
ENT_TOTAL      = 32     # config.entTotal
REL_TOTAL      = 8      # config.relTotal
HIDDEN         = 32     # config.hidden_size
BATCH_SIZE     = 4      # config.batch_size       (positives)
BATCH_SEQ_SIZE = 8      # config.batch_seq_size   (positives + negatives)
MARGIN         = 1.0    # config.margin
C_REG          = 0.25   # config.C
EPS_CFG        = 0.1    # config.eps
L_NORM         = 2      # config.L (PairwiseDistance p)
PD_EPS         = 1e-6   # torch.nn.PairwiseDistance default eps (added to diff)
NORM_EPS       = 1e-12  # F.normalize default eps

assert BATCH_SEQ_SIZE == 2 * BATCH_SIZE, "positive i is paired with negative i+BATCH_SIZE"


def transh_loss_kernel(idx_ref,                       # SMEM (scalar prefetch): (3*B,) int32 [h | r | t]
                       ent_ref, rel_ref, nv_ref,      # VMEM embedding tables
                       out_ref,                       # SMEM (1, 1) f32 loss
                       h_buf, t_buf, r_buf, rn_buf):  # VMEM scratch (B, H) gather buffers
    B = BATCH_SEQ_SIZE

    # ---- fused embedding gathers: indices from SMEM, rows from VMEM --------
    for i in range(B):                                # static unroll, B is small
        hi = idx_ref[i]
        ri = idx_ref[B + i]
        ti = idx_ref[2 * B + i]
        h_buf[pl.ds(i, 1), :]  = ent_ref[pl.ds(hi, 1), :]
        t_buf[pl.ds(i, 1), :]  = ent_ref[pl.ds(ti, 1), :]
        r_buf[pl.ds(i, 1), :]  = rel_ref[pl.ds(ri, 1), :]
        rn_buf[pl.ds(i, 1), :] = nv_ref[pl.ds(ri, 1), :]

    h  = h_buf[...]          # (B, H)
    t  = t_buf[...]          # (B, H)
    r  = r_buf[...]          # (B, H)
    rn = rn_buf[...]         # (B, H)

    # _transfer: norm = F.normalize(norm, p=2, dim=-1); e - sum(e*norm,-1,True)*norm
    # rsqrt(max(ss, eps^2)) == 1 / max(sqrt(ss), eps)   (EUP rsqrt + VPU mul, no divide)
    rn_inv  = lax.rsqrt(jnp.maximum(jnp.sum(rn * rn, axis=-1, keepdims=True),
                                    NORM_EPS * NORM_EPS))
    rn_unit = rn * rn_inv
    h_p = h - jnp.sum(h * rn_unit, axis=-1, keepdims=True) * rn_unit
    t_p = t - jnp.sum(t * rn_unit, axis=-1, keepdims=True) * rn_unit

    # _calc: PairwiseDistance(p=L)(h+r, t) == ||(h+r) - t + eps||_L per row
    diff = h_p + r - t_p + PD_EPS
    if L_NORM == 2:
        score = jnp.sqrt(jnp.sum(diff * diff, axis=-1, keepdims=True))   # (B, 1)
    else:
        score = jnp.sum(jnp.abs(diff), axis=-1, keepdims=True)           # (B, 1)

    # margin ranking loss: positive row i paired with negative row i+BATCH_SIZE.
    # Bring negatives onto positive rows with a sublane roll (shift == half the
    # batch, so roll direction is irrelevant) + iota row mask — no unaligned
    # sublane slices.
    neg = pltpu.roll(score, shift=BATCH_SIZE, axis=0)
    row = lax.broadcasted_iota(jnp.int32, (B, 1), 0)
    terms = jnp.where(row < BATCH_SIZE,
                      jnp.maximum(score - neg + MARGIN, 0.0),
                      0.0)
    margin_loss = jnp.sum(terms) * (1.0 / BATCH_SIZE)

    # entity norm regularizer: sum(relu(||ent_w||_2 - 1))  (true norm needed -> sqrt)
    ent = ent_ref[...]                                                    # (E, H)
    ent_l2 = jnp.sqrt(jnp.sum(ent * ent, axis=-1, keepdims=True))
    entity_loss = jnp.sum(jnp.maximum(ent_l2 - 1.0, 0.0))

    # orthogonality regularizer: sum(relu( <nv, rel>/||rel||_2 - eps^2 ))
    # (no clamp on ||rel||, same as the PyTorch source)
    rel = rel_ref[...]                                                    # (R, H)
    nv  = nv_ref[...]                                                     # (R, H)
    orth = (jnp.sum(nv * rel, axis=-1, keepdims=True)
            * lax.rsqrt(jnp.sum(rel * rel, axis=-1, keepdims=True)))
    orth_loss = jnp.sum(jnp.maximum(orth - EPS_CFG ** 2, 0.0))

    out_ref[0, 0] = margin_loss + C_REG * (entity_loss * (1.0 / ENT_TOTAL)
                                           + orth_loss * (1.0 / REL_TOTAL))


@jax.jit
def transh_forward(triples, ent_w, rel_w, nv_w):
    # triples: (BATCH_SEQ_SIZE, 3) int32, columns = [h, r, t] (torch.chunk dim=1)
    # Flatten indices into one 1-D int32 vector [h | r | t] for SMEM prefetch.
    idx = jnp.concatenate([triples[:, 0], triples[:, 1], triples[:, 2]]).astype(jnp.int32)

    vmem = pl.BlockSpec(memory_space=pltpu.MemorySpace.VMEM)
    grid_spec = pltpu.PrefetchScalarGridSpec(
        num_scalar_prefetch=1,                 # idx -> SMEM, visible inside kernel
        grid=(1,),
        in_specs=[vmem, vmem, vmem],           # ent / rel / norm tables, whole-array VMEM
        out_specs=pl.BlockSpec(memory_space=pltpu.MemorySpace.SMEM),
        scratch_shapes=[pltpu.VMEM((BATCH_SEQ_SIZE, HIDDEN), jnp.float32)
                        for _ in range(4)],    # h / t / r / rn gather buffers
    )
    loss = pl.pallas_call(
        transh_loss_kernel,
        out_shape=jax.ShapeDtypeStruct((1, 1), jnp.float32),
        grid_spec=grid_spec,
        compiler_params=pltpu.CompilerParams(dimension_semantics=("arbitrary",)),
    )(idx, ent_w, rel_w, nv_w)
    return loss[0, 0]


def transh_ref(triples, ent_w, rel_w, nv_w):
    """Pure-JAX reference (mirrors the PyTorch forward)."""
    h  = ent_w[triples[:, 0]]
    t  = ent_w[triples[:, 2]]
    r  = rel_w[triples[:, 1]]
    rn = nv_w[triples[:, 1]]
    rn_unit = rn / jnp.maximum(jnp.linalg.norm(rn, axis=-1, keepdims=True), NORM_EPS)
    h_p = h - jnp.sum(h * rn_unit, -1, keepdims=True) * rn_unit
    t_p = t - jnp.sum(t * rn_unit, -1, keepdims=True) * rn_unit
    diff = h_p + r - t_p + PD_EPS
    score = jnp.linalg.norm(diff, ord=L_NORM, axis=-1)
    p, n = score[:BATCH_SIZE], score[BATCH_SIZE:BATCH_SEQ_SIZE]
    margin_loss = jnp.sum(jax.nn.relu(p - n + MARGIN)) / BATCH_SIZE
    entity_loss = jnp.sum(jax.nn.relu(jnp.linalg.norm(ent_w, axis=1) - 1.0))
    orth_loss = jnp.sum(jax.nn.relu(
        jnp.sum(nv_w * rel_w, axis=1) / jnp.linalg.norm(rel_w, axis=1)
        - EPS_CFG ** 2))
    return margin_loss + C_REG * (entity_loss / ENT_TOTAL + orth_loss / REL_TOTAL)


def xavier_uniform(key, shape):
    # torch.nn.init.xavier_uniform_ on a (num_embeddings, dim) 2D tensor
    fan_out, fan_in = shape
    bound = float(np.sqrt(6.0 / (fan_in + fan_out)))
    return jax.random.uniform(key, shape, jnp.float32, -bound, bound)


if __name__ == "__main__":
    key = jax.random.PRNGKey(0)
    k_ent, k_rel, k_nv, k_h, k_r, k_t = jax.random.split(key, 6)

    ent_w = xavier_uniform(k_ent, (ENT_TOTAL, HIDDEN))
    rel_w = xavier_uniform(k_rel, (REL_TOTAL, HIDDEN))
    nv_w  = xavier_uniform(k_nv,  (REL_TOTAL, HIDDEN))

    batch_h = jax.random.randint(k_h, (BATCH_SEQ_SIZE,), 0, ENT_TOTAL, jnp.int32)
    batch_r = jax.random.randint(k_r, (BATCH_SEQ_SIZE,), 0, REL_TOTAL, jnp.int32)
    batch_t = jax.random.randint(k_t, (BATCH_SEQ_SIZE,), 0, ENT_TOTAL, jnp.int32)
    triples = jnp.stack([batch_h, batch_r, batch_t], axis=1)   # (B, 3) like torch input

    loss = transh_forward(triples, ent_w, rel_w, nv_w)
    jax.block_until_ready(loss)

    ref = transh_ref(triples, ent_w, rel_w, nv_w)
    np.testing.assert_allclose(np.asarray(loss), np.asarray(ref),
                               rtol=1e-4, atol=1e-5)
    print("KERNEL_OK")
</pallas_src>

<mosaic_0001>
module attributes {stable_mosaic.version = 11 : i64} {
  func.func @transh_loss_kernel(%arg0: i32, %arg1: memref<24xi32, #tpu.memory_space<smem>>, %arg2: memref<32x32xf32, #tpu.memory_space<vmem>>, %arg3: memref<8x32xf32, #tpu.memory_space<vmem>>, %arg4: memref<8x32xf32, #tpu.memory_space<vmem>>, %arg5: memref<1x1xf32, #tpu.memory_space<smem>>, %arg6: memref<8x32xf32, #tpu.memory_space<vmem>>, %arg7: memref<8x32xf32, #tpu.memory_space<vmem>>, %arg8: memref<8x32xf32, #tpu.memory_space<vmem>>, %arg9: memref<8x32xf32, #tpu.memory_space<vmem>>) attributes {dimension_semantics = [#tpu.dimension_semantics<arbitrary>], iteration_bounds = array<i64: 1>, scalar_prefetch = 1 : i64, scratch_operands = 4 : i64, tpu.core_type = #tpu.core_type<tc>, window_params = [{pipeline_mode = #tpu.pipeline_mode<synchronous>, transform_indices = @transform_0, window_bounds = array<i64: 32, 32>}, {pipeline_mode = #tpu.pipeline_mode<synchronous>, transform_indices = @transform_1, window_bounds = array<i64: 8, 32>}, {pipeline_mode = #tpu.pipeline_mode<synchronous>, transform_indices = @transform_2, window_bounds = array<i64: 8, 32>}, {transform_indices = @transform_3, window_bounds = array<i64: 1, 1>}]} {
    %c0 = arith.constant 0 : index
    %0 = memref.load %arg1[%c0] : memref<24xi32, #tpu.memory_space<smem>>
    %c8 = arith.constant 8 : index
    %1 = memref.load %arg1[%c8] : memref<24xi32, #tpu.memory_space<smem>>
    %c16 = arith.constant 16 : index
    %2 = memref.load %arg1[%c16] : memref<24xi32, #tpu.memory_space<smem>>
    %3 = arith.index_cast %0 : i32 to index
    %c0_0 = arith.constant 0 : index
    %4 = vector.load %arg2[%3, %c0_0] : memref<32x32xf32, #tpu.memory_space<vmem>>, vector<1x32xf32>
    %c0_1 = arith.constant 0 : index
    %c0_2 = arith.constant 0 : index
    %5 = vector.load %arg6[%c0_1, %c0_2] : memref<8x32xf32, #tpu.memory_space<vmem>>, vector<1x32xf32>
    tpu.vector_store %arg6[%c0_1, %c0_2], %4 {strides = array<i32>} : memref<8x32xf32, #tpu.memory_space<vmem>>, vector<1x32xf32>,
    %6 = arith.index_cast %2 : i32 to index
    %c0_3 = arith.constant 0 : index
    %7 = vector.load %arg2[%6, %c0_3] : memref<32x32xf32, #tpu.memory_space<vmem>>, vector<1x32xf32>
    %c0_4 = arith.constant 0 : index
    %c0_5 = arith.constant 0 : index
    %8 = vector.load %arg7[%c0_4, %c0_5] : memref<8x32xf32, #tpu.memory_space<vmem>>, vector<1x32xf32>
    tpu.vector_store %arg7[%c0_4, %c0_5], %7 {strides = array<i32>} : memref<8x32xf32, #tpu.memory_space<vmem>>, vector<1x32xf32>,
    %9 = arith.index_cast %1 : i32 to index
    %c0_6 = arith.constant 0 : index
    %10 = vector.load %arg3[%9, %c0_6] : memref<8x32xf32, #tpu.memory_space<vmem>>, vector<1x32xf32>
    %c0_7 = arith.constant 0 : index
    %c0_8 = arith.constant 0 : index
    %11 = vector.load %arg8[%c0_7, %c0_8] : memref<8x32xf32, #tpu.memory_space<vmem>>, vector<1x32xf32>
    tpu.vector_store %arg8[%c0_7, %c0_8], %10 {strides = array<i32>} : memref<8x32xf32, #tpu.memory_space<vmem>>, vector<1x32xf32>,
    %12 = arith.index_cast %1 : i32 to index
    %c0_9 = arith.constant 0 : index
    %13 = vector.load %arg4[%12, %c0_9] : memref<8x32xf32, #tpu.memory_space<vmem>>, vector<1x32xf32>
    %c0_10 = arith.constant 0 : index
    %c0_11 = arith.constant 0 : index
    %14 = vector.load %arg9[%c0_10, %c0_11] : memref<8x32xf32, #tpu.memory_space<vmem>>, vector<1x32xf32>
    tpu.vector_store %arg9[%c0_10, %c0_11], %13 {strides = array<i32>} : memref<8x32xf32, #tpu.memory_space<vmem>>, vector<1x32xf32>,
    %c1 = arith.constant 1 : index
    %15 = memref.load %arg1[%c1] : memref<24xi32, #tpu.memory_space<smem>>
    %c9 = arith.constant 9 : index
    %16 = memref.load %arg1[%c9] : memref<24xi32, #tpu.memory_space<smem>>
    %c17 = arith.constant 17 : index
    %17 = memref.load %arg1[%c17] : memref<24xi32, #tpu.memory_space<smem>>
    %18 = arith.index_cast %15 : i32 to index
    %c0_12 = arith.constant 0 : index
    %19 = vector.load %arg2[%18, %c0_12] : memref<32x32xf32, #tpu.memory_space<vmem>>, vector<1x32xf32>
    %c1_13 = arith.constant 1 : index
    %c0_14 = arith.constant 0 : index
    %20 = vector.load %arg6[%c1_13, %c0_14] : memref<8x32xf32, #tpu.memory_space<vmem>>, vector<1x32xf32>
    tpu.vector_store %arg6[%c1_13, %c0_14], %19 {strides = array<i32>} : memref<8x32xf32, #tpu.memory_space<vmem>>, vector<1x32xf32>,
    %21 = arith.index_cast %17 : i32 to index
    %c0_15 = arith.constant 0 : index
    %22 = vector.load %arg2[%21, %c0_15] : memref<32x32xf32, #tpu.memory_space<vmem>>, vector<1x32xf32>
    %c1_16 = arith.constant 1 : index
    %c0_17 = arith.constant 0 : index
    %23 = vector.load %arg7[%c1_16, %c0_17] : memref<8x32xf32, #tpu.memory_space<vmem>>, vector<1x32xf32>
    tpu.vector_store %arg7[%c1_16, %c0_17], %22 {strides = array<i32>} : memref<8x32xf32, #tpu.memory_space<vmem>>, vector<1x32xf32>,
    %24 = arith.index_cast %16 : i32 to index
    %c0_18 = arith.constant 0 : index
    %25 = vector.load %arg3[%24, %c0_18] : memref<8x32xf32, #tpu.memory_space<vmem>>, vector<1x32xf32>
    %c1_19 = arith.constant 1 : index
    %c0_20 = arith.constant 0 : index
    %26 = vector.load %arg8[%c1_19, %c0_20] : memref<8x32xf32, #tpu.memory_space<vmem>>, vector<1x32xf32>
    tpu.vector_store %arg8[%c1_19, %c0_20], %25 {strides = array<i32>} : memref<8x32xf32, #tpu.memory_space<vmem>>, vector<1x32xf32>,
    %27 = arith.index_cast %16 : i32 to index
    %c0_21 = arith.constant 0 : index
    %28 = vector.load %arg4[%27, %c0_21] : memref<8x32xf32, #tpu.memory_space<vmem>>, vector<1x32xf32>
    %c1_22 = arith.constant 1 : index
    %c0_23 = arith.constant 0 : index
    %29 = vector.load %arg9[%c1_22, %c0_23] : memref<8x32xf32, #tpu.memory_space<vmem>>, vector<1x32xf32>
    tpu.vector_store %arg9[%c1_22, %c0_23], %28 {strides = array<i32>} : memref<8x32xf32, #tpu.memory_space<vmem>>, vector<1x32xf32>,
    %c2 = arith.constant 2 : index
    %30 = memref.load %arg1[%c2] : memref<24xi32, #tpu.memory_space<smem>>
    %c10 = arith.constant 10 : index
    %31 = memref.load %arg1[%c10] : memref<24xi32, #tpu.memory_space<smem>>
    %c18 = arith.constant 18 : index
    %32 = memref.load %arg1[%c18] : memref<24xi32, #tpu.memory_space<smem>>
    %33 = arith.index_cast %30 : i32 to index
    %c0_24 = arith.constant 0 : index
    %34 = vector.load %arg2[%33, %c0_24] : memref<32x32xf32, #tpu.memory_space<vmem>>, vector<1x32xf32>
    %c2_25 = arith.constant 2 : index
    %c0_26 = arith.constant 0 : index
    %35 = vector.load %arg6[%c2_25, %c0_26] : memref<8x32xf32, #tpu.memory_space<vmem>>, vector<1x32xf32>
    tpu.vector_store %arg6[%c2_25, %c0_26], %34 {strides = array<i32>} : memref<8x32xf32, #tpu.memory_space<vmem>>, vector<1x32xf32>,
    %36 = arith.index_cast %32 : i32 to index
    %c0_27 = arith.constant 0 : index
    %37 = vector.load %arg2[%36, %c0_27] : memref<32x32xf32, #tpu.memory_space<vmem>>, vector<1x32xf32>
    %c2_28 = arith.constant 2 : index
    %c0_29 = arith.constant 0 : index
    %38 = vector.load %arg7[%c2_28, %c0_29] : memref<8x32xf32, #tpu.memory_space<vmem>>, vector<1x32xf32>
    tpu.vector_store %arg7[%c2_28, %c0_29], %37 {strides = array<i32>} : memref<8x32xf32, #tpu.memory_space<vmem>>, vector<1x32xf32>,
    %39 = arith.index_cast %31 : i32 to index
    %c0_30 = arith.constant 0 : index
    %40 = vector.load %arg3[%39, %c0_30] : memref<8x32xf32, #tpu.memory_space<vmem>>, vector<1x32xf32>
    %c2_31 = arith.constant 2 : index
    %c0_32 = arith.constant 0 : index
    %41 = vector.load %arg8[%c2_31, %c0_32] : memref<8x32xf32, #tpu.memory_space<vmem>>, vector<1x32xf32>
    tpu.vector_store %arg8[%c2_31, %c0_32], %40 {strides = array<i32>} : memref<8x32xf32, #tpu.memory_space<vmem>>, vector<1x32xf32>,
    %42 = arith.index_cast %31 : i32 to index
    %c0_33 = arith.constant 0 : index
    %43 = vector.load %arg4[%42, %c0_33] : memref<8x32xf32, #tpu.memory_space<vmem>>, vector<1x32xf32>
    %c2_34 = arith.constant 2 : index
    %c0_35 = arith.constant 0 : index
    %44 = vector.load %arg9[%c2_34, %c0_35] : memref<8x32xf32, #tpu.memory_space<vmem>>, vector<1x32xf32>
    tpu.vector_store %arg9[%c2_34, %c0_35], %43 {strides = array<i32>} : memref<8x32xf32, #tpu.memory_space<vmem>>, vector<1x32xf32>,
    %c3 = arith.constant 3 : index
    %45 = memref.load %arg1[%c3] : memref<24xi32, #tpu.memory_space<smem>>
    %c11 = arith.constant 11 : index
    %46 = memref.load %arg1[%c11] : memref<24xi32, #tpu.memory_space<smem>>
    %c19 = arith.constant 19 : index
    %47 = memref.load %arg1[%c19] : memref<24xi32, #tpu.memory_space<smem>>
    %48 = arith.index_cast %45 : i32 to index
    %c0_36 = arith.constant 0 : index
    %49 = vector.load %arg2[%48, %c0_36] : memref<32x32xf32, #tpu.memory_space<vmem>>, vector<1x32xf32>
    %c3_37 = arith.constant 3 : index
    %c0_38 = arith.constant 0 : index
    %50 = vector.load %arg6[%c3_37, %c0_38] : memref<8x32xf32, #tpu.memory_space<vmem>>, vector<1x32xf32>
    tpu.vector_store %arg6[%c3_37, %c0_38], %49 {strides = array<i32>} : memref<8x32xf32, #tpu.memory_space<vmem>>, vector<1x32xf32>,
    %51 = arith.index_cast %47 : i32 to index
    %c0_39 = arith.constant 0 : index
    %52 = vector.load %arg2[%51, %c0_39] : memref<32x32xf32, #tpu.memory_space<vmem>>, vector<1x32xf32>
    %c3_40 = arith.constant 3 : index
    %c0_41 = arith.constant 0 : index
    %53 = vector.load %arg7[%c3_40, %c0_41] : memref<8x32xf32, #tpu.memory_space<vmem>>, vector<1x32xf32>
    tpu.vector_store %arg7[%c3_40, %c0_41], %52 {strides = array<i32>} : memref<8x32xf32, #tpu.memory_space<vmem>>, vector<1x32xf32>,
    %54 = arith.index_cast %46 : i32 to index
    %c0_42 = arith.constant 0 : index
    %55 = vector.load %arg3[%54, %c0_42] : memref<8x32xf32, #tpu.memory_space<vmem>>, vector<1x32xf32>
    %c3_43 = arith.constant 3 : index
    %c0_44 = arith.constant 0 : index
    %56 = vector.load %arg8[%c3_43, %c0_44] : memref<8x32xf32, #tpu.memory_space<vmem>>, vector<1x32xf32>
    tpu.vector_store %arg8[%c3_43, %c0_44], %55 {strides = array<i32>} : memref<8x32xf32, #tpu.memory_space<vmem>>, vector<1x32xf32>,
    %57 = arith.index_cast %46 : i32 to index
    %c0_45 = arith.constant 0 : index
    %58 = vector.load %arg4[%57, %c0_45] : memref<8x32xf32, #tpu.memory_space<vmem>>, vector<1x32xf32>
    %c3_46 = arith.constant 3 : index
    %c0_47 = arith.constant 0 : index
    %59 = vector.load %arg9[%c3_46, %c0_47] : memref<8x32xf32, #tpu.memory_space<vmem>>, vector<1x32xf32>
    tpu.vector_store %arg9[%c3_46, %c0_47], %58 {strides = array<i32>} : memref<8x32xf32, #tpu.memory_space<vmem>>, vector<1x32xf32>,
    %c4 = arith.constant 4 : index
    %60 = memref.load %arg1[%c4] : memref<24xi32, #tpu.memory_space<smem>>
    %c12 = arith.constant 12 : index
    %61 = memref.load %arg1[%c12] : memref<24xi32, #tpu.memory_space<smem>>
    %c20 = arith.constant 20 : index
    %62 = memref.load %arg1[%c20] : memref<24xi32, #tpu.memory_space<smem>>
    %63 = arith.index_cast %60 : i32 to index
    %c0_48 = arith.constant 0 : index
    %64 = vector.load %arg2[%63, %c0_48] : memref<32x32xf32, #tpu.memory_space<vmem>>, vector<1x32xf32>
    %c4_49 = arith.constant 4 : index
    %c0_50 = arith.constant 0 : index
    %65 = vector.load %arg6[%c4_49, %c0_50] : memref<8x32xf32, #tpu.memory_space<vmem>>, vector<1x32xf32>
    tpu.vector_store %arg6[%c4_49, %c0_50], %64 {strides = array<i32>} : memref<8x32xf32, #tpu.memory_space<vmem>>, vector<1x32xf32>,
    %66 = arith.index_cast %62 : i32 to index
    %c0_51 = arith.constant 0 : index
    %67 = vector.load %arg2[%66, %c0_51] : memref<32x32xf32, #tpu.memory_space<vmem>>, vector<1x32xf32>
    %c4_52 = arith.constant 4 : index
    %c0_53 = arith.constant 0 : index
    %68 = vector.load %arg7[%c4_52, %c0_53] : memref<8x32xf32, #tpu.memory_space<vmem>>, vector<1x32xf32>
    tpu.vector_store %arg7[%c4_52, %c0_53], %67 {strides = array<i32>} : memref<8x32xf32, #tpu.memory_space<vmem>>, vector<1x32xf32>,
    %69 = arith.index_cast %61 : i32 to index
    %c0_54 = arith.constant 0 : index
    %70 = vector.load %arg3[%69, %c0_54] : memref<8x32xf32, #tpu.memory_space<vmem>>, vector<1x32xf32>
    %c4_55 = arith.constant 4 : index
    %c0_56 = arith.constant 0 : index
    %71 = vector.load %arg8[%c4_55, %c0_56] : memref<8x32xf32, #tpu.memory_space<vmem>>, vector<1x32xf32>
    tpu.vector_store %arg8[%c4_55, %c0_56], %70 {strides = array<i32>} : memref<8x32xf32, #tpu.memory_space<vmem>>, vector<1x32xf32>,
    %72 = arith.index_cast %61 : i32 to index
    %c0_57 = arith.constant 0 : index
    %73 = vector.load %arg4[%72, %c0_57] : memref<8x32xf32, #tpu.memory_space<vmem>>, vector<1x32xf32>
    %c4_58 = arith.constant 4 : index
    %c0_59 = arith.constant 0 : index
    %74 = vector.load %arg9[%c4_58, %c0_59] : memref<8x32xf32, #tpu.memory_space<vmem>>, vector<1x32xf32>
    tpu.vector_store %arg9[%c4_58, %c0_59], %73 {strides = array<i32>} : memref<8x32xf32, #tpu.memory_space<vmem>>, vector<1x32xf32>,
    %c5 = arith.constant 5 : index
    %75 = memref.load %arg1[%c5] : memref<24xi32, #tpu.memory_space<smem>>
    %c13 = arith.constant 13 : index
    %76 = memref.load %arg1[%c13] : memref<24xi32, #tpu.memory_space<smem>>
    %c21 = arith.constant 21 : index
    %77 = memref.load %arg1[%c21] : memref<24xi32, #tpu.memory_space<smem>>
    %78 = arith.index_cast %75 : i32 to index
    %c0_60 = arith.constant 0 : index
    %79 = vector.load %arg2[%78, %c0_60] : memref<32x32xf32, #tpu.memory_space<vmem>>, vector<1x32xf32>
    %c5_61 = arith.constant 5 : index
    %c0_62 = arith.constant 0 : index
    %80 = vector.load %arg6[%c5_61, %c0_62] : memref<8x32xf32, #tpu.memory_space<vmem>>, vector<1x32xf32>
    tpu.vector_store %arg6[%c5_61, %c0_62], %79 {strides = array<i32>} : memref<8x32xf32, #tpu.memory_space<vmem>>, vector<1x32xf32>,
    %81 = arith.index_cast %77 : i32 to index
    %c0_63 = arith.constant 0 : index
    %82 = vector.load %arg2[%81, %c0_63] : memref<32x32xf32, #tpu.memory_space<vmem>>, vector<1x32xf32>
    %c5_64 = arith.constant 5 : index
    %c0_65 = arith.constant 0 : index
    %83 = vector.load %arg7[%c5_64, %c0_65] : memref<8x32xf32, #tpu.memory_space<vmem>>, vector<1x32xf32>
    tpu.vector_store %arg7[%c5_64, %c0_65], %82 {strides = array<i32>} : memref<8x32xf32, #tpu.memory_space<vmem>>, vector<1x32xf32>,
    %84 = arith.index_cast %76 : i32 to index
    %c0_66 = arith.constant 0 : index
    %85 = vector.load %arg3[%84, %c0_66] : memref<8x32xf32, #tpu.memory_space<vmem>>, vector<1x32xf32>
    %c5_67 = arith.constant 5 : index
    %c0_68 = arith.constant 0 : index
    %86 = vector.load %arg8[%c5_67, %c0_68] : memref<8x32xf32, #tpu.memory_space<vmem>>, vector<1x32xf32>
    tpu.vector_store %arg8[%c5_67, %c0_68], %85 {strides = array<i32>} : memref<8x32xf32, #tpu.memory_space<vmem>>, vector<1x32xf32>,
    %87 = arith.index_cast %76 : i32 to index
    %c0_69 = arith.constant 0 : index
    %88 = vector.load %arg4[%87, %c0_69] : memref<8x32xf32, #tpu.memory_space<vmem>>, vector<1x32xf32>
    %c5_70 = arith.constant 5 : index
    %c0_71 = arith.constant 0 : index
    %89 = vector.load %arg9[%c5_70, %c0_71] : memref<8x32xf32, #tpu.memory_space<vmem>>, vector<1x32xf32>
    tpu.vector_store %arg9[%c5_70, %c0_71], %88 {strides = array<i32>} : memref<8x32xf32, #tpu.memory_space<vmem>>, vector<1x32xf32>,
    %c6 = arith.constant 6 : index
    %90 = memref.load %arg1[%c6] : memref<24xi32, #tpu.memory_space<smem>>
    %c14 = arith.constant 14 : index
    %91 = memref.load %arg1[%c14] : memref<24xi32, #tpu.memory_space<smem>>
    %c22 = arith.constant 22 : index
    %92 = memref.load %arg1[%c22] : memref<24xi32, #tpu.memory_space<smem>>
    %93 = arith.index_cast %90 : i32 to index
    %c0_72 = arith.constant 0 : index
    %94 = vector.load %arg2[%93, %c0_72] : memref<32x32xf32, #tpu.memory_space<vmem>>, vector<1x32xf32>
    %c6_73 = arith.constant 6 : index
    %c0_74 = arith.constant 0 : index
    %95 = vector.load %arg6[%c6_73, %c0_74] : memref<8x32xf32, #tpu.memory_space<vmem>>, vector<1x32xf32>
    tpu.vector_store %arg6[%c6_73, %c0_74], %94 {strides = array<i32>} : memref<8x32xf32, #tpu.memory_space<vmem>>, vector<1x32xf32>,
    %96 = arith.index_cast %92 : i32 to index
    %c0_75 = arith.constant 0 : index
    %97 = vector.load %arg2[%96, %c0_75] : memref<32x32xf32, #tpu.memory_space<vmem>>, vector<1x32xf32>
    %c6_76 = arith.constant 6 : index
    %c0_77 = arith.constant 0 : index
    %98 = vector.load %arg7[%c6_76, %c0_77] : memref<8x32xf32, #tpu.memory_space<vmem>>, vector<1x32xf32>
    tpu.vector_store %arg7[%c6_76, %c0_77], %97 {strides = array<i32>} : memref<8x32xf32, #tpu.memory_space<vmem>>, vector<1x32xf32>,
    %99 = arith.index_cast %91 : i32 to index
    %c0_78 = arith.constant 0 : index
    %100 = vector.load %arg3[%99, %c0_78] : memref<8x32xf32, #tpu.memory_space<vmem>>, vector<1x32xf32>
    %c6_79 = arith.constant 6 : index
    %c0_80 = arith.constant 0 : index
    %101 = vector.load %arg8[%c6_79, %c0_80] : memref<8x32xf32, #tpu.memory_space<vmem>>, vector<1x32xf32>
    tpu.vector_store %arg8[%c6_79, %c0_80], %100 {strides = array<i32>} : memref<8x32xf32, #tpu.memory_space<vmem>>, vector<1x32xf32>,
    %102 = arith.index_cast %91 : i32 to index
    %c0_81 = arith.constant 0 : index
    %103 = vector.load %arg4[%102, %c0_81] : memref<8x32xf32, #tpu.memory_space<vmem>>, vector<1x32xf32>
    %c6_82 = arith.constant 6 : index
    %c0_83 = arith.constant 0 : index
    %104 = vector.load %arg9[%c6_82, %c0_83] : memref<8x32xf32, #tpu.memory_space<vmem>>, vector<1x32xf32>
    tpu.vector_store %arg9[%c6_82, %c0_83], %103 {strides = array<i32>} : memref<8x32xf32, #tpu.memory_space<vmem>>, vector<1x32xf32>,
    %c7 = arith.constant 7 : index
    %105 = memref.load %arg1[%c7] : memref<24xi32, #tpu.memory_space<smem>>
    %c15 = arith.constant 15 : index
    %106 = memref.load %arg1[%c15] : memref<24xi32, #tpu.memory_space<smem>>
    %c23 = arith.constant 23 : index
    %107 = memref.load %arg1[%c23] : memref<24xi32, #tpu.memory_space<smem>>
    %108 = arith.index_cast %105 : i32 to index
    %c0_84 = arith.constant 0 : index
    %109 = vector.load %arg2[%108, %c0_84] : memref<32x32xf32, #tpu.memory_space<vmem>>, vector<1x32xf32>
    %c7_85 = arith.constant 7 : index
    %c0_86 = arith.constant 0 : index
    %110 = vector.load %arg6[%c7_85, %c0_86] : memref<8x32xf32, #tpu.memory_space<vmem>>, vector<1x32xf32>
    tpu.vector_store %arg6[%c7_85, %c0_86], %109 {strides = array<i32>} : memref<8x32xf32, #tpu.memory_space<vmem>>, vector<1x32xf32>,
    %111 = arith.index_cast %107 : i32 to index
    %c0_87 = arith.constant 0 : index
    %112 = vector.load %arg2[%111, %c0_87] : memref<32x32xf32, #tpu.memory_space<vmem>>, vector<1x32xf32>
    %c7_88 = arith.constant 7 : index
    %c0_89 = arith.constant 0 : index
    %113 = vector.load %arg7[%c7_88, %c0_89] : memref<8x32xf32, #tpu.memory_space<vmem>>, vector<1x32xf32>
    tpu.vector_store %arg7[%c7_88, %c0_89], %112 {strides = array<i32>} : memref<8x32xf32, #tpu.memory_space<vmem>>, vector<1x32xf32>,
    %114 = arith.index_cast %106 : i32 to index
    %c0_90 = arith.constant 0 : index
    %115 = vector.load %arg3[%114, %c0_90] : memref<8x32xf32, #tpu.memory_space<vmem>>, vector<1x32xf32>
    %c7_91 = arith.constant 7 : index
    %c0_92 = arith.constant 0 : index
    %116 = vector.load %arg8[%c7_91, %c0_92] : memref<8x32xf32, #tpu.memory_space<vmem>>, vector<1x32xf32>
    tpu.vector_store %arg8[%c7_91, %c0_92], %115 {strides = array<i32>} : memref<8x32xf32, #tpu.memory_space<vmem>>, vector<1x32xf32>,
    %117 = arith.index_cast %106 : i32 to index
    %c0_93 = arith.constant 0 : index
    %118 = vector.load %arg4[%117, %c0_93] : memref<8x32xf32, #tpu.memory_space<vmem>>, vector<1x32xf32>
    %c7_94 = arith.constant 7 : index
    %c0_95 = arith.constant 0 : index
    %119 = vector.load %arg9[%c7_94, %c0_95] : memref<8x32xf32, #tpu.memory_space<vmem>>, vector<1x32xf32>
    tpu.vector_store %arg9[%c7_94, %c0_95], %118 {strides = array<i32>} : memref<8x32xf32, #tpu.memory_space<vmem>>, vector<1x32xf32>,
    %c0_96 = arith.constant 0 : index
    %c0_97 = arith.constant 0 : index
    %120 = vector.load %arg6[%c0_96, %c0_97] : memref<8x32xf32, #tpu.memory_space<vmem>>, vector<8x32xf32>
    %c0_98 = arith.constant 0 : index
    %c0_99 = arith.constant 0 : index
    %121 = vector.load %arg7[%c0_98, %c0_99] : memref<8x32xf32, #tpu.memory_space<vmem>>, vector<8x32xf32>
    %c0_100 = arith.constant 0 : index
    %c0_101 = arith.constant 0 : index
    %122 = vector.load %arg8[%c0_100, %c0_101] : memref<8x32xf32, #tpu.memory_space<vmem>>, vector<8x32xf32>
    %c0_102 = arith.constant 0 : index
    %c0_103 = arith.constant 0 : index
    %123 = vector.load %arg9[%c0_102, %c0_103] : memref<8x32xf32, #tpu.memory_space<vmem>>, vector<8x32xf32>
    %124 = arith.mulf %123, %123 : vector<8x32xf32>
    %cst = arith.constant dense<0.000000e+00> : vector<8xf32>
    %125 = vector.multi_reduction <add>, %124, %cst [1] : vector<8x32xf32> to vector<8xf32>
    %126 = vector.shape_cast %125 : vector<8xf32> to vector<8x1xf32>
    %cst_104 = arith.constant 1.000000e-24 : f32
    %127 = vector.broadcast %cst_104 : f32 to vector<8x1xf32>
    %128 = arith.maximumf %126, %127 : vector<8x1xf32>
    %129 = math.rsqrt %128 : vector<8x1xf32>
    %130 = vector.broadcast %129 : vector<8x1xf32> to vector<8x32xf32>
    %131 = arith.mulf %123, %130 : vector<8x32xf32>
    %132 = arith.mulf %120, %131 : vector<8x32xf32>
    %cst_105 = arith.constant dense<0.000000e+00> : vector<8xf32>
    %133 = vector.multi_reduction <add>, %132, %cst_105 [1] : vector<8x32xf32> to vector<8xf32>
    %134 = vector.shape_cast %133 : vector<8xf32> to vector<8x1xf32>
    %135 = vector.broadcast %134 : vector<8x1xf32> to vector<8x32xf32>
    %136 = arith.mulf %135, %131 : vector<8x32xf32>
    %137 = arith.subf %120, %136 : vector<8x32xf32>
    %138 = arith.mulf %121, %131 : vector<8x32xf32>
    %cst_106 = arith.constant dense<0.000000e+00> : vector<8xf32>
    %139 = vector.multi_reduction <add>, %138, %cst_106 [1] : vector<8x32xf32> to vector<8xf32>
    %140 = vector.shape_cast %139 : vector<8xf32> to vector<8x1xf32>
    %141 = vector.broadcast %140 : vector<8x1xf32> to vector<8x32xf32>
    %142 = arith.mulf %141, %131 : vector<8x32xf32>
    %143 = arith.subf %121, %142 : vector<8x32xf32>
    %144 = arith.addf %137, %122 : vector<8x32xf32>
    %145 = arith.subf %144, %143 : vector<8x32xf32>
    %cst_107 = arith.constant 9.99999997E-7 : f32
    %146 = vector.broadcast %cst_107 : f32 to vector<8x32xf32>
    %147 = arith.addf %145, %146 : vector<8x32xf32>
    %148 = arith.mulf %147, %147 : vector<8x32xf32>
    %cst_108 = arith.constant dense<0.000000e+00> : vector<8xf32>
    %149 = vector.multi_reduction <add>, %148, %cst_108 [1] : vector<8x32xf32> to vector<8xf32>
    %150 = vector.shape_cast %149 : vector<8xf32> to vector<8x1xf32>
    %151 = math.sqrt %150 : vector<8x1xf32>
    %c4_i32 = arith.constant 4 : i32
    %152 = tpu.dynamic_rotate %151 by %c4_i32 dim 0 : vector<8x1xf32>, i32 -> vector<8x1xf32>
    %153 = tpu.iota {dimensions = array<i32: 0>} : vector<8x1xi32>
    %c4_i32_109 = arith.constant 4 : i32
    %154 = vector.broadcast %c4_i32_109 : i32 to vector<8x1xi32>
    %155 = arith.cmpi slt, %153, %154 : vector<8x1xi32>
    %156 = arith.subf %151, %152 : vector<8x1xf32>
    %cst_110 = arith.constant 1.000000e+00 : f32
    %157 = vector.broadcast %cst_110 : f32 to vector<8x1xf32>
    %158 = arith.addf %156, %157 : vector<8x1xf32>
    %cst_111 = arith.constant 0.000000e+00 : f32
    %159 = vector.broadcast %cst_111 : f32 to vector<8x1xf32>
    %160 = arith.maximumf %158, %159 : vector<8x1xf32>
    %cst_112 = arith.constant 0.000000e+00 : f32
    %161 = vector.broadcast %cst_112 : f32 to vector<8x1xf32>
    %162 = arith.select %155, %160, %161 : vector<8x1xi1>, vector<8x1xf32>
    %163 = vector.shape_cast %162 : vector<8x1xf32> to vector<1x8x1xf32>
    %cst_113 = arith.constant dense<0.000000e+00> : vector<1xf32>
    %164 = vector.multi_reduction <add>, %163, %cst_113 [1, 2] : vector<1x8x1xf32> to vector<1xf32>
    %165 = vector.shape_cast %164 : vector<1xf32> to vector<1x1x1xf32>
    %166 = vector.extract %165[0, 0, 0] : f32 from vector<1x1x1xf32>
    %cst_114 = arith.constant 2.500000e-01 : f32
    %167 = arith.mulf %166, %cst_114 : f32
    %c0_115 = arith.constant 0 : index
    %c0_116 = arith.constant 0 : index
    %168 = vector.load %arg2[%c0_115, %c0_116] : memref<32x32xf32, #tpu.memory_space<vmem>>, vector<32x32xf32>
    %169 = arith.mulf %168, %168 : vector<32x32xf32>
    %cst_117 = arith.constant dense<0.000000e+00> : vector<32xf32>
    %170 = vector.multi_reduction <add>, %169, %cst_117 [1] : vector<32x32xf32> to vector<32xf32>
    %171 = vector.shape_cast %170 : vector<32xf32> to vector<32x1xf32>
    %172 = math.sqrt %171 : vector<32x1xf32>
    %cst_118 = arith.constant 1.000000e+00 : f32
    %173 = vector.broadcast %cst_118 : f32 to vector<32x1xf32>
    %174 = arith.subf %172, %173 : vector<32x1xf32>
    %cst_119 = arith.constant 0.000000e+00 : f32
    %175 = vector.broadcast %cst_119 : f32 to vector<32x1xf32>
    %176 = arith.maximumf %174, %175 : vector<32x1xf32>
    %177 = vector.shape_cast %176 : vector<32x1xf32> to vector<1x32x1xf32>
    %cst_120 = arith.constant dense<0.000000e+00> : vector<1xf32>
    %178 = vector.multi_reduction <add>, %177, %cst_120 [1, 2] : vector<1x32x1xf32> to vector<1xf32>
    %179 = vector.shape_cast %178 : vector<1xf32> to vector<1x1x1xf32>
    %180 = vector.extract %179[0, 0, 0] : f32 from vector<1x1x1xf32>
    %c0_121 = arith.constant 0 : index
    %c0_122 = arith.constant 0 : index
    %181 = vector.load %arg3[%c0_121, %c0_122] : memref<8x32xf32, #tpu.memory_space<vmem>>, vector<8x32xf32>
    %c0_123 = arith.constant 0 : index
    %c0_124 = arith.constant 0 : index
    %182 = vector.load %arg4[%c0_123, %c0_124] : memref<8x32xf32, #tpu.memory_space<vmem>>, vector<8x32xf32>
    %183 = arith.mulf %182, %181 : vector<8x32xf32>
    %cst_125 = arith.constant dense<0.000000e+00> : vector<8xf32>
    %184 = vector.multi_reduction <add>, %183, %cst_125 [1] : vector<8x32xf32> to vector<8xf32>
    %185 = vector.shape_cast %184 : vector<8xf32> to vector<8x1xf32>
    %186 = arith.mulf %181, %181 : vector<8x32xf32>
    %cst_126 = arith.constant dense<0.000000e+00> : vector<8xf32>
    %187 = vector.multi_reduction <add>, %186, %cst_126 [1] : vector<8x32xf32> to vector<8xf32>
    %188 = vector.shape_cast %187 : vector<8xf32> to vector<8x1xf32>
    %189 = math.rsqrt %188 : vector<8x1xf32>
    %190 = arith.mulf %185, %189 : vector<8x1xf32>
    %cst_127 = arith.constant 0.00999999977 : f32
    %191 = vector.broadcast %cst_127 : f32 to vector<8x1xf32>
    %192 = arith.subf %190, %191 : vector<8x1xf32>
    %cst_128 = arith.constant 0.000000e+00 : f32
    %193 = vector.broadcast %cst_128 : f32 to vector<8x1xf32>
    %194 = arith.maximumf %192, %193 : vector<8x1xf32>
    %195 = vector.shape_cast %194 : vector<8x1xf32> to vector<1x8x1xf32>
    %cst_129 = arith.constant dense<0.000000e+00> : vector<1xf32>
    %196 = vector.multi_reduction <add>, %195, %cst_129 [1, 2] : vector<1x8x1xf32> to vector<1xf32>
    %197 = vector.shape_cast %196 : vector<1xf32> to vector<1x1x1xf32>
    %198 = vector.extract %197[0, 0, 0] : f32 from vector<1x1x1xf32>
    %cst_130 = arith.constant 3.125000e-02 : f32
    %199 = arith.mulf %180, %cst_130 : f32
    %cst_131 = arith.constant 1.250000e-01 : f32
    %200 = arith.mulf %198, %cst_131 : f32
    %201 = arith.addf %199, %200 : f32
    %cst_132 = arith.constant 2.500000e-01 : f32
    %202 = arith.mulf %cst_132, %201 : f32
    %203 = arith.addf %167, %202 : f32
    %c0_133 = arith.constant 0 : index
    %c0_134 = arith.constant 0 : index
    %204 = memref.load %arg5[%c0_133, %c0_134] : memref<1x1xf32, #tpu.memory_space<smem>>
    memref.store %203, %arg5[%c0_133, %c0_134] : memref<1x1xf32, #tpu.memory_space<smem>>
    return
  }
  func.func @transform_0(%arg0: i32, %arg1: memref<24xi32, #tpu.memory_space<smem>>) -> (i32, i32) {
    %c0_i32 = arith.constant 0 : i32
    %c0_i32_0 = arith.constant 0 : i32
    %c0_i32_1 = arith.constant 0 : i32
    return %c0_i32, %c0_i32_0 : i32, i32
  }
  func.func @transform_1(%arg0: i32, %arg1: memref<24xi32, #tpu.memory_space<smem>>) -> (i32, i32) {
    %c0_i32 = arith.constant 0 : i32
    %c0_i32_0 = arith.constant 0 : i32
    %c0_i32_1 = arith.constant 0 : i32
    return %c0_i32, %c0_i32_0 : i32, i32
  }
  func.func @transform_2(%arg0: i32, %arg1: memref<24xi32, #tpu.memory_space<smem>>) -> (i32, i32) {
    %c0_i32 = arith.constant 0 : i32
    %c0_i32_0 = arith.constant 0 : i32
    %c0_i32_1 = arith.constant 0 : i32
    return %c0_i32, %c0_i32_0 : i32, i32
  }
  func.func @transform_3(%arg0: i32, %arg1: memref<24xi32, #tpu.memory_space<smem>>) -> (i32, i32) {
    %c0_i32 = arith.constant 0 : i32
    %c0_i32_0 = arith.constant 0 : i32
    %c0_i32_1 = arith.constant 0 : i32
    return %c0_i32, %c0_i32_0 : i32, i32
  }
}

</mosaic_0001>

<bundles_post_ra>
// kernel: transh_forward.1
= control target key start
LH: loop header
LB: loop body
LE: loop exit
PB: predicated region body
PF: predicated region fallthrough
CT: control target
= control target key end

     0   :  { %s562_s18 = smov [#allocation7]   ;;  %s744_s0 = inlined_call_operand.vmem [shape: s32[24], index: 0, kind: input, shape index: {}]   ;;  %s745_s1 = inlined_call_operand.hbm [shape: f32[32,32], index: 1, kind: input, shape index: {}]   ;;  %s746_s2 = inlined_call_operand.vmem [shape: f32[8,32], index: 2, kind: input, shape index: {}]   ;;  %s747_s3 = inlined_call_operand.hbm [shape: f32[8,32], index: 3, kind: input, shape index: {}]   ;;  %s748_s4 = inlined_call_operand.hbm [shape: f32[1,1], index: 4, kind: output, shape index: {}]  }
   0x1   :  { %s10_s17 = sshll.u32 %s744_s0, 4  ;;  %s11_s17 = int_to_ptr.vmem [resolvable:$true] %s10_s17 }
   0x2   :  { %13 = dma.vmem_to_smem %s11_s17, 16, %s562_s18, [#allocation6] }
   0x3   :  { %554 = dma.done.wait [#allocation6], 16 }
   0x4   :  { %555 = vsyncadd [#allocation6], 4294967280 }
   0x5   :  { %16 = sfence }
   0x6   :  { %17 = vsyncpa [#allocation9], 0 }
   0x7   :  { %18 = vsyncpa [#allocation12], 0 }
   0x8   :  { %19 = vsyncpa [#allocation10], 0  ;;  %s24_s21 = sshll.u32 %s745_s1, 4  ;;  %s563_s22 = smov [#allocation8]   ;;  %s25_s21 = int_to_ptr.hbm [resolvable:$true] %s24_s21 }
   0x9   :  { %s26_s23 = sshll.u32 %s563_s22, 4  ;;  %s40_s0 = sshll.u32 %s747_s3, 4  ;;  %s27_s23 = int_to_ptr.vmem [resolvable:$true] %s26_s23  ;;  %s41_s0 = int_to_ptr.hbm [resolvable:$true] %s40_s0 }
   0xa   :  { %s564_s26 = smov 128   ;;  %s565_s27 = smov 8  }
   0xb   :  { %32 = dma.hbm_to_vmem [thread:$0]  %s25_s21, 512, %s27_s23, [#allocation9], %s564_s26, %s564_s26, %s565_s27  }
   0xc   :  { %s566_s28 = smov [#allocation11]  }
   0xd   :  { %s42_s29 = sshll.u32 %s566_s28, 4  ;;  %s43_s29 = int_to_ptr.vmem [resolvable:$true] %s42_s29 }
   0xe   :  { %45 = dma.hbm_to_vmem [thread:$0]  %s41_s0, 128, %s43_s29, [#allocation12]  }
   0xf   :  { %556 = dma.done.wait [#allocation9], 512  }
  0x10   :  { %557 = vsyncadd [#allocation9], 4294966784 }
  0x11   :  { %558 = dma.done.wait [#allocation12], 128  }
  0x12   :  { %559 = vsyncadd [#allocation12], 4294967168  ;;  %s602_s1 = sld [smem:[#allocation7 + $0x8]]  ;;  %vm59_vm0 = vcmask 253952   ;;  %vm180_vm1 = vcmask 261120   ;;  %v248_v29 = vld [vmem:[#allocation8 + $0x8] sm:$0xff] }
  0x13   :  { %s604_s30 = sld [smem:[#allocation7 + $0x9]]  ;;  %v252_v30 = vmul.f32 %v248_v29, %v248_v29  ;;  %v247_v44 = vld [vmem:[#allocation8] sm:$0xff]  ;;  %v249_v45 = vld [vmem:[#allocation8 + $0x10] sm:$0xff]  ;;  %v250_v52 = vld [vmem:[#allocation8 + $0x18] sm:$0xff]  ;;  %vm235_vm13 = vcmask 7168  }
  0x14   :  { %s606_s5 = sld [smem:[#allocation7 + $0xa]]  ;;  %v251_v48 = vmul.f32 %v247_v44, %v247_v44  ;;  %v253_v49 = vmul.f32 %v249_v45, %v249_v45  ;;  %v254_v53 = vmul.f32 %v250_v52, %v250_v52  ;;  %v339_v63 = vld [vmem:[%s746_s2] sm:$0xff] }
  0x15   :  { %s608_s3 = sld [smem:[#allocation7 + $0xb]]  ;;  %v258_v31 = vsel %vm180_vm1, %v252_v30, 0.0 }
  0x16   :  { %s610_s6 = sld [smem:[#allocation7 + $0xc]]  ;;  %259 = vadd.xlane.f32.xlu2 %v258_v31  ;;  %v255_v50 = vsel %vm180_vm1, %v251_v48, 0.0  ;;  %v261_v51 = vsel %vm180_vm1, %v253_v49, 0.0  ;;  %v264_v54 = vsel %vm180_vm1, %v254_v53, 0.0 }
  0x17   :  { %s612_s7 = sld [smem:[#allocation7 + $0xd]] }
  0x18   :  { %s614_s8 = sld [smem:[#allocation7 + $0xe]]  ;;  %s67_s9 = scalar_lea.vmem [#allocation11], %s602_s1 }
  0x19   :  { %v68_v0 = vld [vmem:[%s67_s9] sm:$0x1]  ;;  %s617_s10 = sld [smem:[#allocation7 + $0xf]]  ;;  %s82_s11 = scalar_lea.vmem [#allocation11], %s604_s30 }
  0x1a   :  { %69 = vst.msk [vmem:[#allocation5] sm:$0x1] %vm59_vm0, %v68_v0  ;;  %v83_v1 = vld [vmem:[%s82_s11] sm:$0x1]  ;;  %s97_s12 = scalar_lea.vmem [#allocation11], %s606_s5  ;;  %s429_s18 = sld [smem:[#allocation7 + $0x10]] }
  0x1b   :  { %84 = vst.msk [vmem:[#allocation5 + $0x1] sm:$0x1] %vm59_vm0, %v83_v1  ;;  %v98_v2 = vld [vmem:[%s97_s12] sm:$0x1]  ;;  %s112_s13 = scalar_lea.vmem [#allocation11], %s608_s3  ;;  %s432_s19 = sld [smem:[#allocation7 + $0x11]] }
  0x1c   :  { %99 = vst.msk [vmem:[#allocation5 + $0x2] sm:$0x1] %vm59_vm0, %v98_v2  ;;  %v113_v3 = vld [vmem:[%s112_s13] sm:$0x1]  ;;  %s127_s14 = scalar_lea.vmem [#allocation11], %s610_s6  ;;  %s435_s20 = sld [smem:[#allocation7 + $0x12]] }
  0x1d   :  { %114 = vst.msk [vmem:[#allocation5 + $0x3] sm:$0x1] %vm59_vm0, %v113_v3  ;;  %v128_v4 = vld [vmem:[%s127_s14] sm:$0x1]  ;;  %s142_s15 = scalar_lea.vmem [#allocation11], %s612_s7  ;;  %s438_s21 = sld [smem:[#allocation7 + $0x13]] }
  0x1e   :  { %129 = vst.msk [vmem:[#allocation5 + $0x4] sm:$0x1] %vm59_vm0, %v128_v4  ;;  %v143_v5 = vld [vmem:[%s142_s15] sm:$0x1]  ;;  %s157_s16 = scalar_lea.vmem [#allocation11], %s614_s8  ;;  %s441_s22 = sld [smem:[#allocation7 + $0x14]] }
  0x1f   :  { %144 = vst.msk [vmem:[#allocation5 + $0x5] sm:$0x1] %vm59_vm0, %v143_v5  ;;  %v158_v6 = vld [vmem:[%s157_s16] sm:$0x1]  ;;  %s172_s17 = scalar_lea.vmem [#allocation11], %s617_s10  ;;  %s444_s23 = sld [smem:[#allocation7 + $0x15]] }
  0x20   :  { %159 = vst.msk [vmem:[#allocation5 + $0x6] sm:$0x1] %vm59_vm0, %v158_v6  ;;  %v173_v7 = vld [vmem:[%s172_s17] sm:$0x1]  ;;  %s447_s24 = sld [smem:[#allocation7 + $0x16]]  ;;  %s61_s11 = scalar_lea.vmem [#allocation8], %s429_s18 }
  0x21   :  { %174 = vst.msk [vmem:[#allocation5 + $0x7] sm:$0x1] %vm59_vm0, %v173_v7  ;;  %s639_s25 = sld [smem:[#allocation7 + $0x17]]  ;;  %v62_v11 = vld [vmem:[%s61_s11] sm:$0x1]  ;;  %s76_s12 = scalar_lea.vmem [#allocation8], %s432_s19 }
  0x22   :  { %s641_s0 = sld [smem:[#allocation7]]  ;;  %v77_v12 = vld [vmem:[%s76_s12] sm:$0x1]  ;;  %s91_s13 = scalar_lea.vmem [#allocation8], %s435_s20  ;;  %63 = vst.msk [vmem:[#allocation3] sm:$0x1] %vm59_vm0, %v62_v11 }
  0x23   :  { %s643_s26 = sld [smem:[#allocation7 + $0x1]]  ;;  %v92_v13 = vld [vmem:[%s91_s13] sm:$0x1]  ;;  %s106_s14 = scalar_lea.vmem [#allocation8], %s438_s21  ;;  %78 = vst.msk [vmem:[#allocation3 + $0x1] sm:$0x1] %vm59_vm0, %v77_v12 }
  0x24   :  { %s645_s27 = sld [smem:[#allocation7 + $0x2]]  ;;  %v107_v14 = vld [vmem:[%s106_s14] sm:$0x1]  ;;  %s121_s16 = scalar_lea.vmem [#allocation8], %s441_s22  ;;  %93 = vst.msk [vmem:[#allocation3 + $0x2] sm:$0x1] %vm59_vm0, %v92_v13 }
  0x25   :  { %s647_s28 = sld [smem:[#allocation7 + $0x3]]  ;;  %v122_v15 = vld [vmem:[%s121_s16] sm:$0x1]  ;;  %s136_s18 = scalar_lea.vmem [#allocation8], %s444_s23  ;;  %108 = vst.msk [vmem:[#allocation3 + $0x3] sm:$0x1] %vm59_vm0, %v107_v14 }
  0x26   :  { %s649_s29 = sld [smem:[#allocation7 + $0x4]]  ;;  %v137_v16 = vld [vmem:[%s136_s18] sm:$0x1]  ;;  %s151_s19 = scalar_lea.vmem [#allocation8], %s447_s24  ;;  %123 = vst.msk [vmem:[#allocation3 + $0x4] sm:$0x1] %vm59_vm0, %v122_v15  ;;  %v345_v15 = vmul.f32 %v339_v63, %v339_v63 }
  0x27   :  { %s651_s9 = sld [smem:[#allocation7 + $0x5]]  ;;  %v152_v17 = vld [vmem:[%s151_s19] sm:$0x1]  ;;  %s166_s20 = scalar_lea.vmem [#allocation8], %s639_s25  ;;  %138 = vst.msk [vmem:[#allocation3 + $0x5] sm:$0x1] %vm59_vm0, %v137_v16 }
  0x28   :  { %v634_v8 = vld [vmem:[#allocation5] sm:$0xff]  ;;  %s654_s15 = sld [smem:[#allocation7 + $0x6]]  ;;  %v167_v18 = vld [vmem:[%s166_s20] sm:$0x1]  ;;  %s57_s21 = scalar_lea.vmem [#allocation8], %s641_s0  ;;  %v346_v16 = vsel %vm180_vm1, %v345_v15, 0.0 }
  0x29   :  { %v179_v9 = vmul.f32 %v634_v8, %v634_v8  ;;  %s657_s17 = sld [smem:[#allocation7 + $0x7]]  ;;  %v58_v19 = vld [vmem:[%s57_s21] sm:$0x1]  ;;  %153 = vst.msk [vmem:[#allocation3 + $0x6] sm:$0x1] %vm59_vm0, %v152_v17  ;;  %s73_s22 = scalar_lea.vmem [#allocation8], %s643_s26 }
  0x2a   :  { %v74_v20 = vld [vmem:[%s73_s22] sm:$0x1]  ;;  %168 = vst.msk [vmem:[#allocation3 + $0x7] sm:$0x1] %vm59_vm0, %v167_v18  ;;  %s88_s23 = scalar_lea.vmem [#allocation8], %s645_s27  ;;  %s79_s13 = scalar_lea.vmem %s746_s2, %s604_s30 }
  0x2b   :  { %v181_v10 = vsel %vm180_vm1, %v179_v9, 0.0  ;;  %v89_v21 = vld [vmem:[%s88_s23] sm:$0x1]  ;;  %60 = vst.msk [vmem:[#allocation2] sm:$0x1] %vm59_vm0, %v58_v19  ;;  %s103_s24 = scalar_lea.vmem [#allocation8], %s647_s28  ;;  %s94_s16 = scalar_lea.vmem %s746_s2, %s606_s5 }
  0x2c   :  { %182 = vadd.xlane.f32.xlu0 %v181_v10  ;;  %v104_v22 = vld [vmem:[%s103_s24] sm:$0x1]  ;;  %75 = vst.msk [vmem:[#allocation2 + $0x1] sm:$0x1] %vm59_vm0, %v74_v20  ;;  %s118_s25 = scalar_lea.vmem [#allocation8], %s649_s29  ;;  %s109_s19 = scalar_lea.vmem %s746_s2, %s608_s3 }
  0x2d   :  { %v119_v23 = vld [vmem:[%s118_s25] sm:$0x1]  ;;  %90 = vst.msk [vmem:[#allocation2 + $0x2] sm:$0x1] %vm59_vm0, %v89_v21  ;;  %s133_s0 = scalar_lea.vmem [#allocation8], %s651_s9  ;;  %s64_s9 = scalar_lea.vmem %s746_s2, %s602_s1 }
  0x2e   :  { %v134_v24 = vld [vmem:[%s133_s0] sm:$0x1]  ;;  %105 = vst.msk [vmem:[#allocation2 + $0x3] sm:$0x1] %vm59_vm0, %v104_v22  ;;  %s148_s26 = scalar_lea.vmem [#allocation8], %s654_s15  ;;  %s124_s22 = scalar_lea.vmem %s746_s2, %s610_s6 }
  0x2f   :  { %v149_v25 = vld [vmem:[%s148_s26] sm:$0x1]  ;;  %120 = vst.msk [vmem:[#allocation2 + $0x4] sm:$0x1] %vm59_vm0, %v119_v23  ;;  %s163_s27 = scalar_lea.vmem [#allocation8], %s657_s17  ;;  %s139_s24 = scalar_lea.vmem %s746_s2, %s612_s7 }
  0x30   :  { %v164_v26 = vld [vmem:[%s163_s27] sm:$0x1]  ;;  %135 = vst.msk [vmem:[#allocation2 + $0x5] sm:$0x1] %vm59_vm0, %v134_v24  ;;  %s154_s25 = scalar_lea.vmem %s746_s2, %s614_s8  ;;  %s169_s6 = scalar_lea.vmem %s746_s2, %s617_s10 }
  0x31   :  { %150 = vst.msk [vmem:[#allocation2 + $0x6] sm:$0x1] %vm59_vm0, %v149_v25  ;;  %v176_v39 = vld [vmem:[#allocation3] sm:$0xff]  ;;  %v65_v55 = vld [vmem:[%s64_s9] sm:$0x1] }
  0x32   :  { %165 = vst.msk [vmem:[#allocation2 + $0x7] sm:$0x1] %vm59_vm0, %v164_v26  ;;  %v80_v56 = vld [vmem:[%s79_s13] sm:$0x1]  ;;  %s384_s13 = sshll.u32 %s748_s4, 4  ;;  %s385_s13 = int_to_ptr.hbm [resolvable:$true] %s384_s13 }
  0x33   :  { %v95_v57 = vld [vmem:[%s94_s16] sm:$0x1]  ;;  %66 = vst.msk [vmem:[#allocation4] sm:$0x1] %vm59_vm0, %v65_v55  ;;  %s567_s16 = smov [#allocation13]  }
  0x34   :  { %v110_v58 = vld [vmem:[%s109_s19] sm:$0x1]  ;;  %81 = vst.msk [vmem:[#allocation4 + $0x1] sm:$0x1] %vm59_vm0, %v80_v56 }
  0x35   :  { %v125_v59 = vld [vmem:[%s124_s22] sm:$0x1]  ;;  %96 = vst.msk [vmem:[#allocation4 + $0x2] sm:$0x1] %vm59_vm0, %v95_v57 }
  0x36   :  { %v140_v60 = vld [vmem:[%s139_s24] sm:$0x1]  ;;  %111 = vst.msk [vmem:[#allocation4 + $0x3] sm:$0x1] %vm59_vm0, %v110_v58 }
  0x37   :  { %v155_v61 = vld [vmem:[%s154_s25] sm:$0x1]  ;;  %126 = vst.msk [vmem:[#allocation4 + $0x4] sm:$0x1] %vm59_vm0, %v125_v59 }
  0x38   :  { %v170_v62 = vld [vmem:[%s169_s6] sm:$0x1]  ;;  %141 = vst.msk [vmem:[#allocation4 + $0x5] sm:$0x1] %vm59_vm0, %v140_v60 }
  0x39   :  { %v175_v40 = vld [vmem:[#allocation2] sm:$0xff]  ;;  %156 = vst.msk [vmem:[#allocation4 + $0x6] sm:$0x1] %vm59_vm0, %v155_v61 }
  0x3a   :  { %171 = vst.msk [vmem:[#allocation4 + $0x7] sm:$0x1] %vm59_vm0, %v170_v62  ;;  %v340_v0 = vld [vmem:[#allocation11] sm:$0xff] }
  0x3b   :  { %v341_v1 = vmul.f32 %v340_v0, %v339_v63 }
  0x3d   :  { %v342_v2 = vsel %vm180_vm1, %v341_v1, 0.0 }
  0x41   :  { %v177_v7 = vld [vmem:[#allocation4] sm:$0xff] }
  0x89   :  { %v260_v17 = vpop.xlane.xlu2 %259 }
  0x8a   :  { %vm286_vm6 = vcmp.eq.f32.partialorder %v260_v17, inf  ;;  %vm288_vm8 = vcmp.eq.f32.partialorder %v260_v17, 0.0 }
  0x9f   :  { %v183_v27 = vpop.xlane.xlu0 %182 }
  0xa0   :  { %v184_v28 = vmax.f32 %v183_v27, 1e-24 }
  0xa2   :  { %468 = vrsqrt.f32 %v184_v28  ;;  %vm191_vm3 = vweird.f32 %v184_v28 }
  0xa3   :  { %470 = vrsqrt.f32 %v260_v17 }
  0xa8   :  { %v469_v32 = vpop.eup %468 }
  0xa9   :  { %v186_v33 = vmul.f32 %v469_v32, %v184_v28  ;;  %vm192_vm2 = vweird.f32 %v469_v32  ;;  %v471_v19 = vpop.eup %470 }
  0xaa   :  { %vm193_vm4 = vmor %vm191_vm3, %vm192_vm2  ;;  %v280_v23 = vmul.f32 %v471_v19, %v260_v17 }
  0xab   :  { %v187_v34 = vmul.f32 %v469_v32, %v186_v33 }
  0xac   :  { %v281_v26 = vmul.f32 %v471_v19, %v280_v23 }
  0xad   :  { %v188_v35 = vmul.f32 0.5, %v187_v34 }
  0xae   :  { %v282_v29 = vmul.f32 0.5, %v281_v26 }
  0xaf   :  { %v189_v36 = vsub.f32 1.5, %v188_v35 }
  0xb0   :  { %v283_v33 = vsub.f32 1.5, %v282_v29 }
  0xb1   :  { %v190_v37 = vmul.f32 %v469_v32, %v189_v36 }
  0xb3   :  { %v194_v38 = vsel %vm193_vm4, %v469_v32, %v190_v37  ;;  %v284_v37 = vmul.f32 %v471_v19, %v283_v33 }
  0xb4   :  { %v195_v41 = vmul.f32 %v194_v38, %v634_v8 }
  0xb6   :  { %v202_v42 = vmul.f32 %v195_v41, %v176_v39  ;;  %v196_v43 = vmul.f32 %v195_v41, %v175_v40 }
  0xb8   :  { %v203_v46 = vsel %vm180_vm1, %v202_v42, 0.0  ;;  %v197_v47 = vsel %vm180_vm1, %v196_v43, 0.0 }
  0xb9   :  { %204 = vadd.xlane.f32.xlu1 %v203_v46  ;;  %198 = vadd.xlane.f32.xlu0 %v197_v47  ;;  %v289_v47 = vand.u32 2147483648, %v260_v17 }
  0xc1   :  { %256 = vadd.xlane.f32.xlu1 %v255_v50  ;;  %262 = vadd.xlane.f32.xlu0 %v261_v51 }
  0xc9   :  { %265 = vadd.xlane.f32.xlu1 %v264_v54  ;;  %343 = vadd.xlane.f32.xlu0 %v342_v2 }
 0x12c   :  { %v205_v3 = vpop.xlane.xlu1 %204  ;;  %v199_v4 = vpop.xlane.xlu0 %198 }
 0x12d   :  { %v206_v5 = vmul.f32 %v205_v3, %v195_v41  ;;  %v200_v6 = vmul.f32 %v199_v4, %v195_v41  ;;  %v285_v41 = vmul.f32 %v284_v37, %v260_v17 }
 0x12f   :  { %v201_v8 = vsub.f32 %v175_v40, %v200_v6  ;;  %v207_v9 = vsub.f32 %v176_v39, %v206_v5  ;;  %v287_v49 = vsel %vm286_vm6, %v260_v17, %v285_v41 }
 0x130   :  { %v290_v51 = vsel %vm288_vm8, %v289_v47, %v287_v49 }
 0x131   :  { %v208_v10 = vadd.f32 %v201_v8, %v177_v7  ;;  %v452_v58 = vadd.f32 -1.0, %v290_v51 }
 0x133   :  { %v209_v11 = vsub.f32 %v208_v10, %v207_v9  ;;  %v320_v63 = vmax.f32 %v452_v58, 0.0 }
 0x134   :  { %v257_v18 = vpop.xlane.xlu1 %256  ;;  %v263_v20 = vpop.xlane.xlu0 %262 }
 0x135   :  { %v210_v12 = vadd.f32 1e-06, %v209_v11  ;;  %472 = vrsqrt.f32 %v257_v18  ;;  %vm274_vm5 = vcmp.eq.f32.partialorder %v257_v18, inf  ;;  %v277_v46 = vand.u32 2147483648, %v257_v18 }
 0x136   :  { %474 = vrsqrt.f32 %v263_v20  ;;  %vm276_vm7 = vcmp.eq.f32.partialorder %v257_v18, 0.0  ;;  %vm298_vm9 = vcmp.eq.f32.partialorder %v263_v20, inf  ;;  %vm300_vm10 = vcmp.eq.f32.partialorder %v263_v20, 0.0 }
 0x137   :  { %v211_v13 = vmul.f32 %v210_v12, %v210_v12  ;;  %v301_v53 = vand.u32 2147483648, %v263_v20  ;;  %v324_v4 = vsel %vm235_vm13, %v320_v63, 0.0 }
 0x139   :  { %v212_v14 = vsel %vm180_vm1, %v211_v13, 0.0 }
 0x13a   :  { %213 = vadd.xlane.f32.xlu2 %v212_v14 }
 0x13b   :  { %v473_v21 = vpop.eup %472 }
 0x13c   :  { %v268_v22 = vmul.f32 %v473_v21, %v257_v18  ;;  %v266_v24 = vpop.xlane.xlu1 %265  ;;  %v475_v27 = vpop.eup %474 }
 0x13d   :  { %476 = vrsqrt.f32 %v266_v24  ;;  %v292_v30 = vmul.f32 %v475_v27, %v263_v20  ;;  %vm310_vm11 = vcmp.eq.f32.partialorder %v266_v24, inf  ;;  %v313_v57 = vand.u32 2147483648, %v266_v24  ;;  %v344_v33 = vpop.xlane.xlu0 %343 }
 0x13e   :  { %v269_v25 = vmul.f32 %v473_v21, %v268_v22  ;;  %vm312_vm12 = vcmp.eq.f32.partialorder %v266_v24, 0.0 }
 0x13f   :  { %v293_v34 = vmul.f32 %v475_v27, %v292_v30 }
 0x140   :  { %v270_v28 = vmul.f32 0.5, %v269_v25  ;;  %v228_v25 = vlaneseq }
 0x141   :  { %v294_v38 = vmul.f32 0.5, %v293_v34 }
 0x142   :  { %347 = vadd.xlane.f32.xlu2 %v346_v16  ;;  %v271_v32 = vsub.f32 1.5, %v270_v28 }
 0x143   :  { %v477_v31 = vpop.eup %476  ;;  %v295_v42 = vsub.f32 1.5, %v294_v38 }
 0x144   :  { %v304_v35 = vmul.f32 %v477_v31, %v266_v24  ;;  %v272_v36 = vmul.f32 %v473_v21, %v271_v32 }
 0x145   :  { %v296_v44 = vmul.f32 %v475_v27, %v295_v42 }
 0x146   :  { %v305_v39 = vmul.f32 %v477_v31, %v304_v35  ;;  %v273_v40 = vmul.f32 %v272_v36, %v257_v18 }
 0x147   :  { %v297_v52 = vmul.f32 %v296_v44, %v263_v20 }
 0x148   :  { %v306_v43 = vmul.f32 0.5, %v305_v39  ;;  %v275_v48 = vsel %vm274_vm5, %v257_v18, %v273_v40 }
 0x149   :  { %v278_v50 = vsel %vm276_vm7, %v277_v46, %v275_v48  ;;  %v299_v56 = vsel %vm298_vm9, %v263_v20, %v297_v52 }
 0x14a   :  { %v307_v45 = vsub.f32 1.5, %v306_v43  ;;  %v451_v55 = vadd.f32 -1.0, %v278_v50  ;;  %v302_v59 = vsel %vm300_vm10, %v301_v53, %v299_v56 }
 0x14b   :  { %v453_v62 = vadd.f32 -1.0, %v302_v59 }
 0x14c   :  { %v308_v54 = vmul.f32 %v477_v31, %v307_v45  ;;  %v319_v61 = vmax.f32 %v451_v55, 0.0  ;;  %v229_v31 = vshrl.u32 %v228_v25, 7 }
 0x14d   :  { %v321_v3 = vmax.f32 %v453_v62, 0.0 }
 0x14e   :  { %v309_v60 = vmul.f32 %v308_v54, %v266_v24  ;;  %v323_v1 = vsel %vm235_vm13, %v319_v61, 0.0  ;;  %vm230_vm3 = vcmp.lt.s32.totalorder %v229_v31, 4 }
 0x14f   :  { %v325_v6 = vadd.f32 %v324_v4, %v323_v1  ;;  %v326_v7 = vsel %vm235_vm13, %v321_v3, 0.0 }
 0x150   :  { %v311_v0 = vsel %vm310_vm11, %v266_v24, %v309_v60 }
 0x151   :  { %v314_v2 = vsel %vm312_vm12, %v313_v57, %v311_v0  ;;  %v327_v9 = vadd.f32 %v326_v7, %v325_v6 }
 0x152   :  { %v454_v5 = vadd.f32 -1.0, %v314_v2 }
 0x154   :  { %v322_v8 = vmax.f32 %v454_v5, 0.0 }
 0x156   :  { %v328_v10 = vsel %vm235_vm13, %v322_v8, 0.0 }
 0x157   :  { %v329_v11 = vadd.f32 %v328_v10, %v327_v9 }
 0x159   :  { %330 = vadd.xlane.f32.xlu2 %v329_v11 }
 0x1ad   :  { %v214_v12 = vpop.xlane.xlu2 %213 }
 0x1ae   :  { %478 = vrsqrt.f32 %v214_v12  ;;  %vm222_vm14 = vcmp.eq.f32.partialorder %v214_v12, inf  ;;  %v225_v24 = vand.u32 2147483648, %v214_v12  ;;  %vm224_vm15 = vcmp.eq.f32.partialorder %v214_v12, 0.0 }
 0x1b4   :  { %v479_v13 = vpop.eup %478 }
 0x1b5   :  { %v216_v14 = vmul.f32 %v479_v13, %v214_v12  ;;  %v348_v15 = vpop.xlane.xlu2 %347 }
 0x1b6   :  { %480 = vrsqrt.f32 %v348_v15  ;;  %vm355_vm1 = vweird.f32 %v348_v15 }
 0x1b7   :  { %v217_v16 = vmul.f32 %v479_v13, %v216_v14 }
 0x1b9   :  { %v218_v17 = vmul.f32 0.5, %v217_v16 }
 0x1bb   :  { %v219_v18 = vsub.f32 1.5, %v218_v17 }
 0x1bc   :  { %v481_v19 = vpop.eup %480 }
 0x1bd   :  { %v350_v20 = vmul.f32 %v481_v19, %v348_v15  ;;  %v220_v21 = vmul.f32 %v479_v13, %v219_v18  ;;  %vm356_vm0 = vweird.f32 %v481_v19 }
 0x1be   :  { %vm357_vm2 = vmor %vm355_vm1, %vm356_vm0 }
 0x1bf   :  { %v351_v22 = vmul.f32 %v481_v19, %v350_v20  ;;  %v221_v23 = vmul.f32 %v220_v21, %v214_v12 }
 0x1c1   :  { %v352_v26 = vmul.f32 0.5, %v351_v22  ;;  %v223_v27 = vsel %vm222_vm14, %v214_v12, %v221_v23 }
 0x1c2   :  { %v226_v28 = vsel %vm224_vm15, %v225_v24, %v223_v27 }
 0x1c3   :  { %v353_v29 = vsub.f32 1.5, %v352_v26  ;;  %v227_v30 = vrot.slane %v226_v28, 4 }
 0x1c5   :  { %v354_v32 = vmul.f32 %v481_v19, %v353_v29  ;;  %v231_v34 = vsub.f32 %v226_v28, %v227_v30 }
 0x1c7   :  { %v358_v35 = vsel %vm357_vm2, %v481_v19, %v354_v32  ;;  %v232_v36 = vadd.f32 1.0, %v231_v34 }
 0x1c8   :  { %v359_v37 = vmul.f32 %v358_v35, %v344_v33 }
 0x1c9   :  { %v233_v38 = vmax.f32 %v232_v36, 0.0 }
 0x1ca   :  { %v455_v39 = vadd.f32 -0.01, %v359_v37 }
 0x1cb   :  { %v234_v40 = vsel %vm230_vm3, %v233_v38, 0.0 }
 0x1cc   :  { %v361_v41 = vmax.f32 %v455_v39, 0.0  ;;  %v236_v42 = vsel %vm235_vm13, %v234_v40, 0.0  ;;  %v331_v44 = vpop.xlane.xlu2 %330 }
 0x1cd   :  { %237 = vadd.xlane.f32.xlu1 %v236_v42  ;;  %v332_v45 = vrot.slane %v331_v44, 4 }
 0x1ce   :  { %v362_v43 = vsel %vm235_vm13, %v361_v41, 0.0 }
 0x1cf   :  { %363 = vadd.xlane.f32.xlu0 %v362_v43  ;;  %v333_v46 = vadd.f32 %v332_v45, %v331_v44 }
 0x1d1   :  { %v334_v47 = vrot.slane %v333_v46, 2 }
 0x1d3   :  { %v335_v53 = vadd.f32 %v334_v47, %v333_v46 }
 0x1d5   :  { %v336_v58 = vrot.slane %v335_v53, 1 }
 0x1d7   :  { %v337_v63 = vadd.f32 %v336_v58, %v335_v53 }
 0x240   :  { %v238_v48 = vpop.xlane.xlu1 %237 }
 0x241   :  { %v239_v49 = vrot.slane %v238_v48, 4 }
 0x242   :  { %v364_v50 = vpop.xlane.xlu0 %363 }
 0x243   :  { %v240_v51 = vadd.f32 %v239_v49, %v238_v48  ;;  %v365_v52 = vrot.slane %v364_v50, 4 }
 0x245   :  { %v241_v54 = vrot.slane %v240_v51, 2  ;;  %v366_v55 = vadd.f32 %v365_v52, %v364_v50 }
 0x247   :  { %v367_v56 = vrot.slane %v366_v55, 2  ;;  %v242_v57 = vadd.f32 %v241_v54, %v240_v51 }
 0x249   :  { %v368_v59 = vadd.f32 %v367_v56, %v366_v55  ;;  %v243_v60 = vrot.slane %v242_v57, 1 }
 0x24b   :  { %v244_v61 = vadd.f32 %v243_v60, %v242_v57  ;;  %v369_v62 = vrot.slane %v368_v59, 1 }
 0x24d   :  { %456 = vpush %v244_v61  ;;  %v370_v0 = vadd.f32 %v369_v62, %v368_v59 }
 0x24e   :  { %458 = vpush %v337_v63 }
 0x24f   :  { %460 = vpush %v370_v0 }
 0x27e   :  { %s457_s2 = spop %456 }
 0x27f   :  { %s459_s10 = spop %458  ;;  %s246_s9 = smul.f32 0.25, %s457_s2 }
 0x280   :  { %s372_s26 = smul.f32 0.03125, %s459_s10  ;;  %s461_s27 = spop %460 }
 0x281   :  { %s373_s28 = smul.f32 0.125, %s461_s27 }
 0x283   :  { %s374_s29 = sadd.f32 %s373_s28, %s372_s26 }
 0x285   :  { %s375_s14 = smul.f32 0.25, %s374_s29 }
 0x287   :  { %s376_s15 = sadd.f32 %s375_s14, %s246_s9 }
 0x289   :  { %378 = sst [smem:[#allocation13]] %s376_s15 }
 0x28a   :  { %387 = dma.smem_to_hbm %s567_s16, 16, %s385_s13, [#allocation10]  }
 0x28b   :  { %560 = dma.done.wait [#allocation10], 16  }
 0x28c   :  { %561 = vsyncadd [#allocation10], 4294967280 }
 0x28d   :  { %392 = sfence }
 0x28e   :  { %393 = vsyncpa [#allocation9], 1 }
 0x28f   :  { %394 = vsyncpa [#allocation12], 1 }
 0x290   :  { %395 = vsyncpa [#allocation10], 1 }

</bundles_post_ra>
